<compile_context>
chip_gen: v7x
topology: tpu7x:2x2x1
jax: 0.10.0
libtpu: 0.0.40
codegen_flags: <defaults>
</compile_context>

<pallas_src>
import math

import jax
import jax.numpy as jnp
from jax.experimental import pallas as pl
from jax.experimental.pallas import tpu as pltpu


def _round_up(a: int, b: int) -> int:
    return ((a + b - 1) // b) * b


def _sublane_multiple(dtype) -> int:
    # Native TPU tiles: f32 (8,128), bf16/f16 (16,128), int8/fp8 (32,128).
    itemsize = jnp.dtype(dtype).itemsize
    return max(8, 32 // max(itemsize, 1))


def _vmem_capacity_bytes() -> int:
    """Per-TensorCore VMEM capacity; conservative fallback if not queryable."""
    try:
        return int(pltpu.get_tpu_info().vmem_capacity_bytes)
    except Exception:
        return 64 << 20  # v7x per-TC physical VMEM (smallest of the targets)


def _choose_fold(D: int, M: int):
    """Pick a row-fold factor so D*fold % 128 == 0 (lane-dense, unmasked stores).

    Returns (fold, rows_padded_to_multiple_of_fold).  The fold is widened
    toward ~1024 lanes only when that does not require any extra row padding
    beyond what the minimal lane-aligning fold already needs.
    """
    MAX_LANE = 8192
    LANE_TARGET = 1024
    g = math.gcd(D, 128)
    base_fold = 128 // g
    base_lane = D * base_fold  # == lcm(D, 128)
    if base_fold == 1:
        # D already a multiple of 128: data is contiguous & lane-dense as-is.
        return 1, max(M, 1)
    if base_lane > MAX_LANE or base_fold > max(M, 1):
        # Folding would explode the lane dim or the row padding; fall back to
        # full-width (un-tiled) last dim with masked stores.
        return 1, max(M, 1)
    m_base = _round_up(max(M, 1), base_fold)
    widen = max(1, LANE_TARGET // base_lane)
    while widen > 1 and (m_base % (base_fold * widen)) != 0:
        widen //= 2
    return base_fold * widen, m_base


def _scaler_kernel_factory(tau: float, mode: str):
    """Build a kernel with tau/mode baked in statically."""

    def kernel(x_ref, s_ref, o_ref):
        # s_ref: (1, D_lane) raw learnable parameter (period-D repeated if folded).
        s = s_ref[...].astype(jnp.float32)
        if mode == "positive":
            scale = tau + (1.0 - tau) * jax.nn.sigmoid(s)
        else:
            scale = (1.0 - tau) * jax.nn.sigmoid(-s)
        # sigmoid/sqrt on one small vreg in f32, cast once; the big tile is
        # multiplied in its native dtype (no full-tile f32 up-cast).
        sqrt_scale = jnp.sqrt(scale).astype(o_ref.dtype)
        o_ref[...] = x_ref[...] * sqrt_scale  # (TM, D_lane) * (1, D_lane)

    return kernel


def scaler_forward(x, scale_param, tau: float = 0.5, mode: str = "positive"):
    """JAX/Pallas equivalent of Scaler.forward.

    x:            any shape (..., D)
    scale_param:  shape (D,) — the nn.Parameter (zeros in the reference module)
    """
    orig_shape = x.shape
    D = orig_shape[-1]
    M = int(math.prod(orig_shape[:-1])) if len(orig_shape) > 1 else 1

    x2d = x.reshape(M, D)

    # ---- lane folding ------------------------------------------------------
    fold, m_padded = _choose_fold(D, M)
    D_lane = D * fold
    if m_padded != M:
        # Only pads by < fold rows, and only when M % fold != 0.
        x2d = jnp.pad(x2d, ((0, m_padded - M), (0, 0)))
    rows = m_padded // fold
    xr = x2d.reshape(rows, D_lane)

    # Period-D repeat (NOT a broadcast) so each folded sub-row gets its scale.
    if fold > 1:
        s_lane = jnp.tile(scale_param.reshape(D), (fold,)).reshape(1, D_lane)
    else:
        s_lane = scale_param.reshape(1, D_lane)

    # ---- row tiling: VMEM-byte-budgeted TM ---------------------------------
    itemsize = jnp.dtype(x.dtype).itemsize
    sub = _sublane_multiple(x.dtype)
    row_bytes = max(D_lane * itemsize, 1)
    PER_BUFFER_BYTES = 3 << 20  # ~3 MiB/buffer; x2 (in+out) x2 (double-buffer) ≈ 12 MiB
    TM = max(sub, (PER_BUFFER_BYTES // row_bytes) // sub * sub)
    # Make sure the "parallel" row axis has >= 2 tiles when the data allows,
    # so both TensorCores on v7x get work (no-op on single-TC v5e/v6e).
    if TM >= rows > sub:
        TM = max(sub, _round_up(pl.cdiv(rows, 2), sub))
    TM = min(TM, _round_up(max(rows, 1), sub))
    grid = pl.cdiv(rows, TM)  # ragged last block handled by Pallas masking

    # ---- VMEM limit: enough for the pipeline, capped per-generation --------
    vmem_cap = _vmem_capacity_bytes()
    pipeline_bytes = 4 * TM * D_lane * itemsize + 2 * D_lane * 4 + (1 << 20)
    vmem_limit = int(min(vmem_cap // 2, max(pipeline_bytes, 16 << 20)))

    kernel = _scaler_kernel_factory(float(tau), mode)

    out = pl.pallas_call(
        kernel,
        out_shape=jax.ShapeDtypeStruct((rows, D_lane), x.dtype),
        grid=(grid,),
        in_specs=[
            pl.BlockSpec((TM, D_lane), lambda i: (i, 0)),
            pl.BlockSpec((1, D_lane), lambda i: (0, 0)),  # stays resident
        ],
        out_specs=pl.BlockSpec((TM, D_lane), lambda i: (i, 0)),
        compiler_params=pltpu.CompilerParams(
            dimension_semantics=("parallel",),
            vmem_limit_bytes=vmem_limit,
        ),
    )(xr, s_lane)

    # Undo folding (and fold padding, if any).
    out = out.reshape(m_padded, D)
    if m_padded != M:
        out = out[:M]
    return out.reshape(orig_shape)


if __name__ == "__main__":
    key = jax.random.PRNGKey(0)
    # Small shape consistent with the module's usage: (batch=2, seq=8, hidden=32)
    B, S, H = 2, 8, 32
    x = jax.random.normal(key, (B, S, H), dtype=jnp.float32)

    tau = 0.5
    # Deterministic parameter init: torch.zeros(inputs.shape[-1])
    scale_param = jnp.zeros((H,), dtype=jnp.float32)

    # positive mode
    out_pos = jax.block_until_ready(scaler_forward(x, scale_param, tau=tau, mode="positive"))
    # negative mode
    out_neg = jax.block_until_ready(scaler_forward(x, scale_param, tau=tau, mode="negative"))

    # Reference check (pure JAX, mirrors the PyTorch math)
    ref_pos = x * jnp.sqrt(tau + (1.0 - tau) * jax.nn.sigmoid(scale_param))
    ref_neg = x * jnp.sqrt((1.0 - tau) * jax.nn.sigmoid(-scale_param))
    assert jnp.allclose(out_pos, ref_pos, atol=1e-5, rtol=1e-5)
    assert jnp.allclose(out_neg, ref_neg, atol=1e-5, rtol=1e-5)

    # Larger shape with non-divisible row count (hits fold padding + bf16 tiles).
    x2 = jax.random.normal(jax.random.PRNGKey(1), (3, 37, H), dtype=jnp.bfloat16)
    out2 = jax.block_until_ready(scaler_forward(x2, scale_param, tau=tau, mode="positive"))
    ref2 = (x2.astype(jnp.float32)
            * jnp.sqrt(tau + (1.0 - tau) * jax.nn.sigmoid(scale_param))).astype(jnp.bfloat16)
    assert jnp.allclose(out2.astype(jnp.float32), ref2.astype(jnp.float32),
                        atol=1e-2, rtol=1e-2)

    # Feature dim that is neither a multiple nor a divisor of 128 (D=96 -> lcm fold).
    x3 = jax.random.normal(jax.random.PRNGKey(2), (4, 17, 96), dtype=jnp.float32)
    sp3 = 0.1 * jax.random.normal(jax.random.PRNGKey(3), (96,), dtype=jnp.float32)
    out3 = jax.block_until_ready(scaler_forward(x3, sp3, tau=tau, mode="negative"))
    ref3 = x3 * jnp.sqrt((1.0 - tau) * jax.nn.sigmoid(-sp3))
    assert jnp.allclose(out3, ref3, atol=1e-5, rtol=1e-5)

    print("KERNEL_OK")
</pallas_src>

<mosaic_0001>
module attributes {stable_mosaic.version = 11 : i64} {
  func.func @kernel(%arg0: i32, %arg1: memref<8x512xf32, #tpu.memory_space<vmem>>, %arg2: memref<1x512xf32, #tpu.memory_space<vmem>>, %arg3: memref<8x512xf32, #tpu.memory_space<vmem>>) attributes {dimension_semantics = [#tpu.dimension_semantics<parallel>], iteration_bounds = array<i64: 1>, scalar_prefetch = 0 : i64, scratch_operands = 0 : i64, tpu.core_type = #tpu.core_type<tc>, window_params = [{transform_indices = @transform_0, window_bounds = array<i64: 8, 512>}, {pipeline_mode = #tpu.pipeline_mode<synchronous>, transform_indices = @transform_1, window_bounds = array<i64: 1, 512>}, {transform_indices = @transform_2, window_bounds = array<i64: 8, 512>}]} {
    %c0 = arith.constant 0 : index
    %c0_0 = arith.constant 0 : index
    %0 = vector.load %arg2[%c0, %c0_0] : memref<1x512xf32, #tpu.memory_space<vmem>>, vector<1x512xf32>
    %1 = arith.negf %0 : vector<1x512xf32>
    %2 = math.exp %1 : vector<1x512xf32>
    %cst = arith.constant 1.000000e+00 : f32
    %3 = vector.broadcast %cst : f32 to vector<1x512xf32>
    %4 = arith.addf %3, %2 : vector<1x512xf32>
    %5 = arith.divf %3, %4 : vector<1x512xf32>
    %cst_1 = arith.constant 5.000000e-01 : f32
    %6 = vector.broadcast %cst_1 : f32 to vector<1x512xf32>
    %7 = arith.mulf %6, %5 : vector<1x512xf32>
    %cst_2 = arith.constant 5.000000e-01 : f32
    %8 = vector.broadcast %cst_2 : f32 to vector<1x512xf32>
    %9 = arith.addf %8, %7 : vector<1x512xf32>
    %10 = math.sqrt %9 : vector<1x512xf32>
    %c0_3 = arith.constant 0 : index
    %c0_4 = arith.constant 0 : index
    %11 = vector.load %arg1[%c0_3, %c0_4] : memref<8x512xf32, #tpu.memory_space<vmem>>, vector<8x512xf32>
    %12 = vector.broadcast %10 : vector<1x512xf32> to vector<8x512xf32>
    %13 = arith.mulf %11, %12 : vector<8x512xf32>
    %c0_5 = arith.constant 0 : index
    %c0_6 = arith.constant 0 : index
    %14 = vector.load %arg3[%c0_5, %c0_6] : memref<8x512xf32, #tpu.memory_space<vmem>>, vector<8x512xf32>
    tpu.vector_store %arg3[%c0_5, %c0_6], %13 {strides = array<i32>} : memref<8x512xf32, #tpu.memory_space<vmem>>, vector<8x512xf32>,
    return
  }
  func.func @transform_0(%arg0: i32) -> (i32, i32) {
    %c0_i32 = arith.constant 0 : i32
    %c0_i32_0 = arith.constant 0 : i32
    return %arg0, %c0_i32 : i32, i32
  }
  func.func @transform_1(%arg0: i32) -> (i32, i32) {
    %c0_i32 = arith.constant 0 : i32
    %c0_i32_0 = arith.constant 0 : i32
    %c0_i32_1 = arith.constant 0 : i32
    return %c0_i32, %c0_i32_0 : i32, i32
  }
  func.func @transform_2(%arg0: i32) -> (i32, i32) {
    %c0_i32 = arith.constant 0 : i32
    %c0_i32_0 = arith.constant 0 : i32
    return %arg0, %c0_i32 : i32, i32
  }
}

</mosaic_0001>

<bundles_post_ra>
// kernel: tpu_custom_call.1
= control target key start
LH: loop header
LB: loop body
LE: loop exit
PB: predicated region body
PF: predicated region fallthrough
CT: control target
= control target key end

     0   :  { %7 = vsyncpa [#allocation3], 0  ;;  %s361_s0 = inlined_call_operand.hbm [shape: f32[1,512], index: 0, kind: input, shape index: {}]   ;;  %s362_s1 = inlined_call_operand.hbm [shape: f32[1,512], index: 1, kind: input, shape index: {}]   ;;  %s363_s2 = inlined_call_operand.hbm [shape: f32[1,512], index: 2, kind: output, shape index: {}]  }
   0x1   :  { %8 = vsyncpa [#allocation6], 0 }
   0x2   :  { %9 = vsyncpa [#allocation4], 0 }
   0x3   :  { %14 = vsyncadd [#allocation3], 448  ;;  %s278_s9 = smov [#allocation2]   ;;  %s206_s13 = scalar_lea.hbm %s361_s0, 64 }
   0x4   :  { %s15_s10 = sshll.u32 %s278_s9, 4  ;;  %p207_p0 = scmp.ne.s32.totalorder %s361_s0, %s206_s13  ;;  %s16_s10 = int_to_ptr.vmem [resolvable:$true] %s15_s10 }
   0x5   :  { %p210_p1 = scmp.lt.u32.totalorder %s206_s13, %s361_s0 }
   0x7   :  { %p212_p2 = pnand %p210_p1, %p207_p0 }
   0x9   :  { %215 = shalt.err (!%p212_p2)
}
   0xa   :  { %s216_s18 = scalar_lea.vmem %s16_s10, 64  ;;  %s220_s19 = scalar_lea.vmem %s16_s10, 512 }
   0xb   :  { %p217_p3 = scmp.ne.s32.totalorder %s16_s10, %s216_s18  ;;  %p221_p4 = scmp.lt.s32.totalorder %s16_s10, %s16_s10 }
   0xc   :  { %p222_p5 = scmp.lt.s32.totalorder %s220_s19, %s216_s18 }
   0xe   :  { %p223_p6 = por %p222_p5, %p221_p4 }
  0x10   :  { %p224_p7 = pnand %p223_p6, %p217_p3 }
  0x12   :  { %227 = shalt.err (!%p224_p7)
}
  0x13   :  { %s279_s20 = smov 64   ;;  %s280_s21 = smov 4  }
  0x14   :  { %21 = dma.hbm_to_vmem [thread:$0]  %s361_s0, 64, %s16_s10, [#allocation3], %s279_s20, %s279_s20, %s280_s21  }
  0x15   :  { %s281_s24 = smov [#allocation5]   ;;  %s228_s28 = scalar_lea.hbm %s362_s1, 64 }
  0x16   :  { %s28_s25 = sshll.u32 %s281_s24, 4  ;;  %p229_p8 = scmp.ne.s32.totalorder %s362_s1, %s228_s28  ;;  %s29_s25 = int_to_ptr.vmem [resolvable:$true] %s28_s25 }
  0x17   :  { %p232_p9 = scmp.lt.u32.totalorder %s228_s28, %s362_s1 }
  0x19   :  { %p234_p10 = pnand %p232_p9, %p229_p8 }
  0x1b   :  { %237 = shalt.err (!%p234_p10)
}
  0x1c   :  { %s238_s5 = scalar_lea.vmem %s29_s25, 64  ;;  %p243_p12 = scmp.lt.s32.totalorder %s29_s25, %s29_s25 }
  0x1d   :  { %p239_p11 = scmp.ne.s32.totalorder %s29_s25, %s238_s5  ;;  %p244_p13 = scmp.lt.s32.totalorder %s238_s5, %s238_s5 }
  0x1f   :  { %p245_p0 = por %p244_p13, %p243_p12 }
  0x21   :  { %p246_p1 = pnand %p245_p0, %p239_p11 }
  0x23   :  { %249 = shalt.err (!%p246_p1)
}
  0x24   :  { %31 = dma.hbm_to_vmem [thread:$0]  %s362_s1, 64, %s29_s25, [#allocation6]  }
  0x25   :  { %272 = dma.done.wait [#allocation3], 512  }
  0x26   :  { %273 = vsyncadd [#allocation3], 4294966784 }
  0x27   :  { %274 = dma.done.wait [#allocation6], 64  }
  0x28   :  { %275 = vsyncadd [#allocation6], 4294967232  ;;  %v38_v0 = vld [vmem:[#allocation5] sm:$0xf]  ;;  %v63_v7 = vlaneseq  ;;  %v282_v8 = vmov 1966171168  }
  0x29   :  { %v193_v1 = vmul.f32 -1.442695, %v38_v0  ;;  %v84_v9 = vunpack.c.l.s4 %v282_v8  ;;  %v54_v38 = vld [vmem:[#allocation2] sm:$0xf]  ;;  %v55_v39 = vld [vmem:[#allocation2 + $0x4] sm:$0xf] }
  0x2a   :  { %v64_v10 = vshrl.u32 %v63_v7, 7  ;;  %v58_v42 = vld [vmem:[#allocation2 + $0x10] sm:$0xf]  ;;  %v59_v44 = vld [vmem:[#allocation2 + $0x14] sm:$0xf]  ;;  %vm326_vm2 = vcmp.lt.s32.totalorder %v63_v7, 512 }
  0x2b   :  { %200 = vpow2.f32 %v193_v1  ;;  %v85_v11 = vunpack.c.0.s8 %v84_v9  ;;  %v56_v47 = vld [vmem:[#allocation2 + $0x8] sm:$0xf]  ;;  %v57_v48 = vld [vmem:[#allocation2 + $0xc] sm:$0xf]  ;;  %v60_v53 = vld [vmem:[#allocation2 + $0x18] sm:$0xf] }
  0x2c   :  { %v65_v14 = vsub.s32 0, %v64_v10  ;;  %v69_v15 = vsub.s32 1, %v64_v10  ;;  %v73_v17 = vsub.s32 2, %v64_v10  ;;  %v77_v18 = vsub.s32 3, %v64_v10  ;;  %v61_v54 = vld [vmem:[#allocation2 + $0x1c] sm:$0xf] }
  0x2d   :  { %v88_v21 = vsub.s32 %v85_v11, %v64_v10 }
  0x35   :  { %v201_v2 = vpop.eup %200 }
  0x36   :  { %v42_v3 = vadd.f32 1.0, %v201_v2 }
  0x38   :  { %202 = vrcp.f32 %v42_v3 }
  0x42   :  { %v203_v4 = vpop.eup %202 }
  0x43   :  { %v45_v5 = vmul.f32 0.5, %v203_v4 }
  0x45   :  { %v46_v6 = vadd.f32 0.5, %v45_v5 }
  0x47   :  { %204 = vrsqrt.f32 %v46_v6  ;;  %vm49_vm0 = vcmp.eq.f32.partialorder %v46_v6, inf  ;;  %v52_v13 = vand.u32 2147483648, %v46_v6  ;;  %vm51_vm1 = vcmp.eq.f32.partialorder %v46_v6, 0.0 }
  0x51   :  { %v205_v12 = vpop.eup %204 }
  0x52   :  { %v48_v16 = vmul.f32 %v205_v12, %v46_v6 }
  0x54   :  { %v50_v19 = vsel %vm49_vm0, %v46_v6, %v48_v16 }
  0x55   :  { %v53_v20 = vsel %vm51_vm1, %v52_v13, %v50_v19 }
  0x56   :  { %v66_v22 = vrot.slane %v53_v20, %v65_v14  ;;  %v70_v23 = vrot.slane %v53_v20, %v69_v15  ;;  %v74_v24 = vrot.slane %v53_v20, %v73_v17  ;;  %v78_v25 = vrot.slane %v53_v20, %v77_v18 }
  0x58   :  { %v79_v26 = vcombine.low %v66_v22, %v70_v23  ;;  %v81_v27 = vcombine.low %v74_v24, %v78_v25  ;;  %v80_v28 = vcombine.high %v66_v22, %v70_v23  ;;  %v82_v29 = vcombine.high %v74_v24, %v78_v25 }
  0x5a   :  { %v89_v30 = vrot.slane %v79_v26, %v88_v21  ;;  %v103_v31 = vrot.slane %v81_v27, %v88_v21  ;;  %v96_v32 = vrot.slane %v80_v28, %v88_v21  ;;  %v110_v33 = vrot.slane %v82_v29, %v88_v21 }
  0x5c   :  { %v111_v34 = vcombine.low %v89_v30, %v103_v31  ;;  %v112_v35 = vcombine.high %v89_v30, %v103_v31  ;;  %v113_v36 = vcombine.low %v96_v32, %v110_v33  ;;  %v114_v37 = vcombine.high %v96_v32, %v110_v33 }
  0x5e   :  { %v121_v40 = vrot.slane %v111_v34, %v88_v21  ;;  %v135_v41 = vrot.slane %v112_v35, %v88_v21  ;;  %v128_v43 = vrot.slane %v113_v36, %v88_v21  ;;  %v142_v45 = vrot.slane %v114_v37, %v88_v21 }
  0x60   :  { %v155_v49 = vmul.f32 %v121_v40, %v54_v38  ;;  %v156_v50 = vmul.f32 %v135_v41, %v55_v39  ;;  %v143_v51 = vcombine.high %v121_v40, %v121_v40  ;;  %v145_v52 = vcombine.high %v135_v41, %v135_v41 }
  0x61   :  { %v159_v55 = vmul.f32 %v128_v43, %v58_v42  ;;  %v160_v56 = vmul.f32 %v142_v45, %v59_v44  ;;  %v144_v57 = vcombine.high %v128_v43, %v128_v43  ;;  %v146_v58 = vcombine.high %v142_v45, %v142_v45 }
  0x62   :  { %167 = vst.msk [vmem:[#allocation7] sm:$0xf] %vm326_vm2, %v155_v49  ;;  %168 = vst.msk [vmem:[#allocation7 + $0x4] sm:$0xf] %vm326_vm2, %v156_v50  ;;  %v157_v59 = vmul.f32 %v143_v51, %v56_v47  ;;  %v158_v60 = vmul.f32 %v145_v52, %v57_v48 }
  0x63   :  { %171 = vst.msk [vmem:[#allocation7 + $0x10] sm:$0xf] %vm326_vm2, %v159_v55  ;;  %172 = vst.msk [vmem:[#allocation7 + $0x14] sm:$0xf] %vm326_vm2, %v160_v56  ;;  %v161_v61 = vmul.f32 %v144_v57, %v60_v53  ;;  %v162_v62 = vmul.f32 %v146_v58, %v61_v54 }
  0x64   :  { %169 = vst.msk [vmem:[#allocation7 + $0x8] sm:$0xf] %vm326_vm2, %v157_v59  ;;  %170 = vst.msk [vmem:[#allocation7 + $0xc] sm:$0xf] %vm326_vm2, %v158_v60 }
  0x65   :  { %173 = vst.msk [vmem:[#allocation7 + $0x18] sm:$0xf] %vm326_vm2, %v161_v61  ;;  %174 = vst.msk [vmem:[#allocation7 + $0x1c] sm:$0xf] %vm326_vm2, %v162_v62 }
  0x66   :  { %179 = vsyncadd [#allocation4], 448  ;;  %s283_s1 = smov [#allocation7]  }
  0x67   :  { %s180_s7 = sshll.u32 %s283_s1, 4  ;;  %s181_s7 = int_to_ptr.vmem [resolvable:$true] %s180_s7 }
  0x68   :  { %s250_s8 = scalar_lea.vmem %s181_s7, 64  ;;  %s254_s9 = scalar_lea.vmem %s181_s7, 512 }
  0x69   :  { %p251_p2 = scmp.ne.s32.totalorder %s181_s7, %s250_s8  ;;  %p255_p3 = scmp.lt.s32.totalorder %s181_s7, %s181_s7 }
  0x6a   :  { %p256_p4 = scmp.lt.s32.totalorder %s254_s9, %s250_s8 }
  0x6c   :  { %p257_p5 = por %p256_p4, %p255_p3 }
  0x6e   :  { %p258_p6 = pnand %p257_p5, %p251_p2 }
  0x70   :  { %261 = shalt.err (!%p258_p6)
}
  0x71   :  { %s262_s12 = scalar_lea.hbm %s363_s2, 64 }
  0x72   :  { %p263_p7 = scmp.ne.s32.totalorder %s363_s2, %s262_s12  ;;  %p266_p8 = scmp.lt.u32.totalorder %s262_s12, %s363_s2 }
  0x74   :  { %p268_p9 = pnand %p266_p8, %p263_p7 }
  0x76   :  { %271 = shalt.err (!%p268_p9)
}
  0x77   :  { %186 = dma.vmem_to_hbm [thread:$0]  %s181_s7, 64, %s363_s2, [#allocation4], %s279_s20, %s279_s20, %s280_s21  }
  0x78   :  { %276 = dma.done.wait [#allocation4], 512  }
  0x79   :  { %277 = vsyncadd [#allocation4], 4294966784 }
  0x7a   :  { %190 = vsyncpa [#allocation3], 1 }
  0x7b   :  { %191 = vsyncpa [#allocation6], 1 }
  0x7c   :  { %192 = vsyncpa [#allocation4], 1 }

</bundles_post_ra>
